<compile_context>
chip_gen: v7x
topology: tpu7x:2x2x1
jax: 0.10.0
libtpu: 0.0.40
codegen_flags: <defaults>
</compile_context>

<pallas_src>
import jax
import jax.numpy as jnp
from jax import lax
from jax.experimental import pallas as pl
from jax.experimental.pallas import tpu as pltpu


def _lstm_kernel(gx_ref, whh_ref, o_ref, h_ref, c_ref):
    """Processes K time steps per grid invocation.

    gx_ref : (K, B, 4H) precomputed x-side gates (x @ W_ih^T + b), time-major.
    whh_ref: (H, 4H)    recurrent weight W_hh^T (constant across the grid).
    o_ref  : (K, B, H)  hidden-state outputs for this time block.
    h_ref, c_ref : (B, H) VMEM scratch carrying state across grid steps.

    Gate order follows PyTorch nn.LSTM: i, f, g, o.
    """
    K = gx_ref.shape[0]
    H = h_ref.shape[1]

    # Zero the carried state on the first time block (matches init_hidden()).
    @pl.when(pl.program_id(0) == 0)
    def _():
        h_ref[...] = jnp.zeros_like(h_ref)
        c_ref[...] = jnp.zeros_like(c_ref)

    whh = whh_ref[...]  # load once per block, reused by all K steps

    def step(k, carry):
        h, c = carry
        # Only the recurrent matmul remains on the sequential critical path.
        gates = gx_ref[k] + jnp.dot(h, whh, preferred_element_type=jnp.float32)
        # NOTE: at H=32 these slices cut a 128-lane vreg at 32-lane boundaries;
        # for production H pad each gate to a 128-lane multiple.
        i_g = jax.nn.sigmoid(gates[:, 0 * H:1 * H])
        f_g = jax.nn.sigmoid(gates[:, 1 * H:2 * H])
        g_g = jnp.tanh(gates[:, 2 * H:3 * H])
        o_g = jax.nn.sigmoid(gates[:, 3 * H:4 * H])
        c = f_g * c + i_g * g_g
        h = o_g * jnp.tanh(c)
        o_ref[k] = h.astype(o_ref.dtype)
        return (h, c)

    # Carry h/c in registers inside the block; unroll so the LLO scheduler can
    # overlap EUP/MXU/VPU work across the K steps.
    h, c = lax.fori_loop(0, K, step, (h_ref[...], c_ref[...]), unroll=True)
    h_ref[...] = h
    c_ref[...] = c


def lstm_forward(x, w_ih, w_hh, b_ih, b_hh, *, time_block=4):
    """x: (B, T, I) float32.  Returns lstm_out: (B, T, H) float32.

    w_ih: (4H, I), w_hh: (4H, H), b_ih/b_hh: (4H,)  -- PyTorch nn.LSTM shapes.
    """
    B, T, I = x.shape
    H = w_hh.shape[1]

    x = x.astype(jnp.float32)
    wih = jnp.transpose(w_ih).astype(jnp.float32)   # (I, 4H)
    whh = jnp.transpose(w_hh).astype(jnp.float32)   # (H, 4H)
    b = (b_ih + b_hh).astype(jnp.float32)           # (4H,)

    # Input projection hoisted out of the recurrence: one large matmul that
    # also produces the slab time-major (no separate transpose of x).
    gates_x = jnp.einsum('bti,ig->tbg', x, wih) + b[None, None, :]  # (T, B, 4H)

    K = min(time_block, T)
    n_blocks = pl.cdiv(T, K)
    Tp = n_blocks * K
    if Tp != T:
        # Padded trailing steps are computed but discarded below.
        gates_x = jnp.pad(gates_x, ((0, Tp - T), (0, 0), (0, 0)))

    out_tbh = pl.pallas_call(
        _lstm_kernel,
        out_shape=jax.ShapeDtypeStruct((Tp, B, H), jnp.float32),
        grid_spec=pltpu.PrefetchScalarGridSpec(
            num_scalar_prefetch=0,
            grid=(n_blocks,),
            in_specs=[
                # K time steps of precomputed x-side gates per grid step.
                pl.BlockSpec((K, B, 4 * H), lambda tb: (tb, 0, 0)),
                # Recurrent weight: constant index -> fetched once, stays
                # resident in VMEM across the whole grid.
                pl.BlockSpec((H, 4 * H), lambda tb: (0, 0)),
            ],
            # Lane-dense (K, B, H) output slab: one writeback DMA per K steps.
            out_specs=pl.BlockSpec((K, B, H), lambda tb: (tb, 0, 0)),
            scratch_shapes=[
                pltpu.VMEM((B, H), jnp.float32),   # h carry (across blocks)
                pltpu.VMEM((B, H), jnp.float32),   # c carry (across blocks)
            ],
        ),
        compiler_params=pltpu.CompilerParams(
            # Time axis carries h/c state -> must stay sequential.
            dimension_semantics=("arbitrary",)),
    )(gates_x, whh)

    # PyTorch batch_first output convention.
    return jnp.transpose(out_tbh[:T], (1, 0, 2))   # (B, T, H)


def lstm_reference(x, w_ih, w_hh, b_ih, b_hh):
    """Pure-JAX reference identical to PyTorch nn.LSTM forward (1 layer)."""
    B, T, I = x.shape
    H = w_hh.shape[1]
    wih = w_ih.T
    whh = w_hh.T
    b = b_ih + b_hh

    def step(carry, x_t):
        h, c = carry
        gates = x_t @ wih + h @ whh + b
        i_g = jax.nn.sigmoid(gates[:, 0 * H:1 * H])
        f_g = jax.nn.sigmoid(gates[:, 1 * H:2 * H])
        g_g = jnp.tanh(gates[:, 2 * H:3 * H])
        o_g = jax.nn.sigmoid(gates[:, 3 * H:4 * H])
        c_new = f_g * c + i_g * g_g
        h_new = o_g * jnp.tanh(c_new)
        return (h_new, c_new), h_new

    h0 = jnp.zeros((B, H), jnp.float32)
    c0 = jnp.zeros((B, H), jnp.float32)
    _, hs = lax.scan(step, (h0, c0), jnp.transpose(x, (1, 0, 2)))
    return jnp.transpose(hs, (1, 0, 2))


if __name__ == "__main__":
    # Small shapes implied by the module: (batch, seq, input_size) -> LSTM(H).
    B, T, I, H = 2, 8, 4, 32

    key = jax.random.PRNGKey(0)
    kx, k1, k2, k3, k4 = jax.random.split(key, 5)

    # PyTorch nn.LSTM default init: U(-1/sqrt(H), 1/sqrt(H)).
    bound = 1.0 / jnp.sqrt(jnp.float32(H))
    x = jax.random.normal(kx, (B, T, I), dtype=jnp.float32)
    w_ih = jax.random.uniform(k1, (4 * H, I), jnp.float32, -bound, bound)
    w_hh = jax.random.uniform(k2, (4 * H, H), jnp.float32, -bound, bound)
    b_ih = jax.random.uniform(k3, (4 * H,), jnp.float32, -bound, bound)
    b_hh = jax.random.uniform(k4, (4 * H,), jnp.float32, -bound, bound)

    # time_block=4 -> grid=(2,), exercising the h/c carry across grid steps.
    out = lstm_forward(x, w_ih, w_hh, b_ih, b_hh, time_block=4)
    jax.block_until_ready(out)

    ref = lstm_reference(x, w_ih, w_hh, b_ih, b_hh)
    assert out.shape == (B, T, H)
    assert jnp.allclose(out, ref, atol=1e-5, rtol=1e-5), "mismatch vs reference"

    print("KERNEL_OK")
</pallas_src>

<mosaic_0001>
module attributes {stable_mosaic.version = 11 : i64} {
  func.func @_lstm_kernel(%arg0: i32, %arg1: memref<4x2x128xf32, #tpu.memory_space<vmem>>, %arg2: memref<32x128xf32, #tpu.memory_space<vmem>>, %arg3: memref<4x2x32xf32, #tpu.memory_space<vmem>>, %arg4: memref<2x32xf32, #tpu.memory_space<vmem>>, %arg5: memref<2x32xf32, #tpu.memory_space<vmem>>) attributes {dimension_semantics = [#tpu.dimension_semantics<arbitrary>], iteration_bounds = array<i64: 2>, scalar_prefetch = 0 : i64, scratch_operands = 2 : i64, tpu.core_type = #tpu.core_type<tc>, window_params = [{transform_indices = @transform_0, window_bounds = array<i64: 4, 2, 128>}, {pipeline_mode = #tpu.pipeline_mode<synchronous>, transform_indices = @transform_1, window_bounds = array<i64: 32, 128>}, {transform_indices = @transform_2, window_bounds = array<i64: 4, 2, 32>}]} {
    %c0_i32 = arith.constant 0 : i32
    %0 = arith.cmpi eq, %arg0, %c0_i32 : i32
    %1 = arith.extui %0 : i1 to i32
    %c0_i32_0 = arith.constant 0 : i32
    %2 = arith.cmpi ne, %1, %c0_i32_0 : i32
    scf.if %2 {
      %cst_42 = arith.constant 0.000000e+00 : f32
      %144 = vector.broadcast %cst_42 : f32 to vector<2x32xf32>
      %c0_43 = arith.constant 0 : index
      %c0_44 = arith.constant 0 : index
      %145 = vector.load %arg4[%c0_43, %c0_44] : memref<2x32xf32, #tpu.memory_space<vmem>>, vector<2x32xf32>
      tpu.vector_store %arg4[%c0_43, %c0_44], %144 {strides = array<i32>} : memref<2x32xf32, #tpu.memory_space<vmem>>, vector<2x32xf32>,
      %cst_45 = arith.constant 0.000000e+00 : f32
      %146 = vector.broadcast %cst_45 : f32 to vector<2x32xf32>
      %c0_46 = arith.constant 0 : index
      %c0_47 = arith.constant 0 : index
      %147 = vector.load %arg5[%c0_46, %c0_47] : memref<2x32xf32, #tpu.memory_space<vmem>>, vector<2x32xf32>
      tpu.vector_store %arg5[%c0_46, %c0_47], %146 {strides = array<i32>} : memref<2x32xf32, #tpu.memory_space<vmem>>, vector<2x32xf32>,
    } else {
    }
    %c0 = arith.constant 0 : index
    %c0_1 = arith.constant 0 : index
    %3 = vector.load %arg2[%c0, %c0_1] : memref<32x128xf32, #tpu.memory_space<vmem>>, vector<32x128xf32>
    %c0_2 = arith.constant 0 : index
    %c0_3 = arith.constant 0 : index
    %4 = vector.load %arg4[%c0_2, %c0_3] : memref<2x32xf32, #tpu.memory_space<vmem>>, vector<2x32xf32>
    %c0_4 = arith.constant 0 : index
    %c0_5 = arith.constant 0 : index
    %5 = vector.load %arg5[%c0_4, %c0_5] : memref<2x32xf32, #tpu.memory_space<vmem>>, vector<2x32xf32>
    %c0_i32_6 = arith.constant 0 : i32
    %6 = arith.index_cast %c0_i32_6 : i32 to index
    %c0_7 = arith.constant 0 : index
    %c0_8 = arith.constant 0 : index
    %7 = vector.load %arg1[%6, %c0_7, %c0_8] : memref<4x2x128xf32, #tpu.memory_space<vmem>>, vector<1x2x128xf32>
    %8 = vector.shape_cast %7 : vector<1x2x128xf32> to vector<2x128xf32>
    %cst = arith.constant dense<0.000000e+00> : vector<2x128xf32>
    %9 = tpu.matmul %4, %3, %cst {dimension_numbers = #tpu.dot_dimension_numbers<[1], [0], [0], [1], [0, 0, 1, 1], [], []>} : vector<2x32xf32>, vector<32x128xf32>, vector<2x128xf32> -> vector<2x128xf32>
    %10 = arith.addf %8, %9 : vector<2x128xf32>
    %11 = vector.extract_strided_slice %10 {offsets = [0, 0], sizes = [2, 32], strides = [1, 1]} : vector<2x128xf32> to vector<2x32xf32>
    %12 = arith.negf %11 : vector<2x32xf32>
    %13 = math.exp %12 : vector<2x32xf32>
    %cst_9 = arith.constant 1.000000e+00 : f32
    %14 = vector.broadcast %cst_9 : f32 to vector<2x32xf32>
    %15 = arith.addf %14, %13 : vector<2x32xf32>
    %16 = arith.divf %14, %15 : vector<2x32xf32>
    %17 = vector.extract_strided_slice %10 {offsets = [0, 32], sizes = [2, 32], strides = [1, 1]} : vector<2x128xf32> to vector<2x32xf32>
    %18 = arith.negf %17 : vector<2x32xf32>
    %19 = math.exp %18 : vector<2x32xf32>
    %cst_10 = arith.constant 1.000000e+00 : f32
    %20 = vector.broadcast %cst_10 : f32 to vector<2x32xf32>
    %21 = arith.addf %20, %19 : vector<2x32xf32>
    %22 = arith.divf %20, %21 : vector<2x32xf32>
    %23 = vector.extract_strided_slice %10 {offsets = [0, 64], sizes = [2, 32], strides = [1, 1]} : vector<2x128xf32> to vector<2x32xf32>
    %24 = math.tanh %23 : vector<2x32xf32>
    %25 = vector.extract_strided_slice %10 {offsets = [0, 96], sizes = [2, 32], strides = [1, 1]} : vector<2x128xf32> to vector<2x32xf32>
    %26 = arith.negf %25 : vector<2x32xf32>
    %27 = math.exp %26 : vector<2x32xf32>
    %cst_11 = arith.constant 1.000000e+00 : f32
    %28 = vector.broadcast %cst_11 : f32 to vector<2x32xf32>
    %29 = arith.addf %28, %27 : vector<2x32xf32>
    %30 = arith.divf %28, %29 : vector<2x32xf32>
    %31 = arith.mulf %22, %5 : vector<2x32xf32>
    %32 = arith.mulf %16, %24 : vector<2x32xf32>
    %33 = arith.addf %31, %32 : vector<2x32xf32>
    %34 = math.tanh %33 : vector<2x32xf32>
    %35 = arith.mulf %30, %34 : vector<2x32xf32>
    %36 = arith.index_cast %c0_i32_6 : i32 to index
    %c0_12 = arith.constant 0 : index
    %c0_13 = arith.constant 0 : index
    %37 = vector.load %arg3[%36, %c0_12, %c0_13] : memref<4x2x32xf32, #tpu.memory_space<vmem>>, vector<1x2x32xf32>
    %38 = vector.shape_cast %37 : vector<1x2x32xf32> to vector<2x32xf32>
    %39 = vector.shape_cast %35 : vector<2x32xf32> to vector<1x2x32xf32>
    tpu.vector_store %arg3[%36, %c0_12, %c0_13], %39 {strides = array<i32>} : memref<4x2x32xf32, #tpu.memory_space<vmem>>, vector<1x2x32xf32>,
    %c1_i32 = arith.constant 1 : i32
    %40 = arith.index_cast %c1_i32 : i32 to index
    %c0_14 = arith.constant 0 : index
    %c0_15 = arith.constant 0 : index
    %41 = vector.load %arg1[%40, %c0_14, %c0_15] : memref<4x2x128xf32, #tpu.memory_space<vmem>>, vector<1x2x128xf32>
    %42 = vector.shape_cast %41 : vector<1x2x128xf32> to vector<2x128xf32>
    %cst_16 = arith.constant dense<0.000000e+00> : vector<2x128xf32>
    %43 = tpu.matmul %35, %3, %cst_16 {dimension_numbers = #tpu.dot_dimension_numbers<[1], [0], [0], [1], [0, 0, 1, 1], [], []>} : vector<2x32xf32>, vector<32x128xf32>, vector<2x128xf32> -> vector<2x128xf32>
    %44 = arith.addf %42, %43 : vector<2x128xf32>
    %45 = vector.extract_strided_slice %44 {offsets = [0, 0], sizes = [2, 32], strides = [1, 1]} : vector<2x128xf32> to vector<2x32xf32>
    %46 = arith.negf %45 : vector<2x32xf32>
    %47 = math.exp %46 : vector<2x32xf32>
    %cst_17 = arith.constant 1.000000e+00 : f32
    %48 = vector.broadcast %cst_17 : f32 to vector<2x32xf32>
    %49 = arith.addf %48, %47 : vector<2x32xf32>
    %50 = arith.divf %48, %49 : vector<2x32xf32>
    %51 = vector.extract_strided_slice %44 {offsets = [0, 32], sizes = [2, 32], strides = [1, 1]} : vector<2x128xf32> to vector<2x32xf32>
    %52 = arith.negf %51 : vector<2x32xf32>
    %53 = math.exp %52 : vector<2x32xf32>
    %cst_18 = arith.constant 1.000000e+00 : f32
    %54 = vector.broadcast %cst_18 : f32 to vector<2x32xf32>
    %55 = arith.addf %54, %53 : vector<2x32xf32>
    %56 = arith.divf %54, %55 : vector<2x32xf32>
    %57 = vector.extract_strided_slice %44 {offsets = [0, 64], sizes = [2, 32], strides = [1, 1]} : vector<2x128xf32> to vector<2x32xf32>
    %58 = math.tanh %57 : vector<2x32xf32>
    %59 = vector.extract_strided_slice %44 {offsets = [0, 96], sizes = [2, 32], strides = [1, 1]} : vector<2x128xf32> to vector<2x32xf32>
    %60 = arith.negf %59 : vector<2x32xf32>
    %61 = math.exp %60 : vector<2x32xf32>
    %cst_19 = arith.constant 1.000000e+00 : f32
    %62 = vector.broadcast %cst_19 : f32 to vector<2x32xf32>
    %63 = arith.addf %62, %61 : vector<2x32xf32>
    %64 = arith.divf %62, %63 : vector<2x32xf32>
    %65 = arith.mulf %56, %33 : vector<2x32xf32>
    %66 = arith.mulf %50, %58 : vector<2x32xf32>
    %67 = arith.addf %65, %66 : vector<2x32xf32>
    %68 = math.tanh %67 : vector<2x32xf32>
    %69 = arith.mulf %64, %68 : vector<2x32xf32>
    %70 = arith.index_cast %c1_i32 : i32 to index
    %c0_20 = arith.constant 0 : index
    %c0_21 = arith.constant 0 : index
    %71 = vector.load %arg3[%70, %c0_20, %c0_21] : memref<4x2x32xf32, #tpu.memory_space<vmem>>, vector<1x2x32xf32>
    %72 = vector.shape_cast %71 : vector<1x2x32xf32> to vector<2x32xf32>
    %73 = vector.shape_cast %69 : vector<2x32xf32> to vector<1x2x32xf32>
    tpu.vector_store %arg3[%70, %c0_20, %c0_21], %73 {strides = array<i32>} : memref<4x2x32xf32, #tpu.memory_space<vmem>>, vector<1x2x32xf32>,
    %c2_i32 = arith.constant 2 : i32
    %74 = arith.index_cast %c2_i32 : i32 to index
    %c0_22 = arith.constant 0 : index
    %c0_23 = arith.constant 0 : index
    %75 = vector.load %arg1[%74, %c0_22, %c0_23] : memref<4x2x128xf32, #tpu.memory_space<vmem>>, vector<1x2x128xf32>
    %76 = vector.shape_cast %75 : vector<1x2x128xf32> to vector<2x128xf32>
    %cst_24 = arith.constant dense<0.000000e+00> : vector<2x128xf32>
    %77 = tpu.matmul %69, %3, %cst_24 {dimension_numbers = #tpu.dot_dimension_numbers<[1], [0], [0], [1], [0, 0, 1, 1], [], []>} : vector<2x32xf32>, vector<32x128xf32>, vector<2x128xf32> -> vector<2x128xf32>
    %78 = arith.addf %76, %77 : vector<2x128xf32>
    %79 = vector.extract_strided_slice %78 {offsets = [0, 0], sizes = [2, 32], strides = [1, 1]} : vector<2x128xf32> to vector<2x32xf32>
    %80 = arith.negf %79 : vector<2x32xf32>
    %81 = math.exp %80 : vector<2x32xf32>
    %cst_25 = arith.constant 1.000000e+00 : f32
    %82 = vector.broadcast %cst_25 : f32 to vector<2x32xf32>
    %83 = arith.addf %82, %81 : vector<2x32xf32>
    %84 = arith.divf %82, %83 : vector<2x32xf32>
    %85 = vector.extract_strided_slice %78 {offsets = [0, 32], sizes = [2, 32], strides = [1, 1]} : vector<2x128xf32> to vector<2x32xf32>
    %86 = arith.negf %85 : vector<2x32xf32>
    %87 = math.exp %86 : vector<2x32xf32>
    %cst_26 = arith.constant 1.000000e+00 : f32
    %88 = vector.broadcast %cst_26 : f32 to vector<2x32xf32>
    %89 = arith.addf %88, %87 : vector<2x32xf32>
    %90 = arith.divf %88, %89 : vector<2x32xf32>
    %91 = vector.extract_strided_slice %78 {offsets = [0, 64], sizes = [2, 32], strides = [1, 1]} : vector<2x128xf32> to vector<2x32xf32>
    %92 = math.tanh %91 : vector<2x32xf32>
    %93 = vector.extract_strided_slice %78 {offsets = [0, 96], sizes = [2, 32], strides = [1, 1]} : vector<2x128xf32> to vector<2x32xf32>
    %94 = arith.negf %93 : vector<2x32xf32>
    %95 = math.exp %94 : vector<2x32xf32>
    %cst_27 = arith.constant 1.000000e+00 : f32
    %96 = vector.broadcast %cst_27 : f32 to vector<2x32xf32>
    %97 = arith.addf %96, %95 : vector<2x32xf32>
    %98 = arith.divf %96, %97 : vector<2x32xf32>
    %99 = arith.mulf %90, %67 : vector<2x32xf32>
    %100 = arith.mulf %84, %92 : vector<2x32xf32>
    %101 = arith.addf %99, %100 : vector<2x32xf32>
    %102 = math.tanh %101 : vector<2x32xf32>
    %103 = arith.mulf %98, %102 : vector<2x32xf32>
    %104 = arith.index_cast %c2_i32 : i32 to index
    %c0_28 = arith.constant 0 : index
    %c0_29 = arith.constant 0 : index
    %105 = vector.load %arg3[%104, %c0_28, %c0_29] : memref<4x2x32xf32, #tpu.memory_space<vmem>>, vector<1x2x32xf32>
    %106 = vector.shape_cast %105 : vector<1x2x32xf32> to vector<2x32xf32>
    %107 = vector.shape_cast %103 : vector<2x32xf32> to vector<1x2x32xf32>
    tpu.vector_store %arg3[%104, %c0_28, %c0_29], %107 {strides = array<i32>} : memref<4x2x32xf32, #tpu.memory_space<vmem>>, vector<1x2x32xf32>,
    %c3_i32 = arith.constant 3 : i32
    %108 = arith.index_cast %c3_i32 : i32 to index
    %c0_30 = arith.constant 0 : index
    %c0_31 = arith.constant 0 : index
    %109 = vector.load %arg1[%108, %c0_30, %c0_31] : memref<4x2x128xf32, #tpu.memory_space<vmem>>, vector<1x2x128xf32>
    %110 = vector.shape_cast %109 : vector<1x2x128xf32> to vector<2x128xf32>
    %cst_32 = arith.constant dense<0.000000e+00> : vector<2x128xf32>
    %111 = tpu.matmul %103, %3, %cst_32 {dimension_numbers = #tpu.dot_dimension_numbers<[1], [0], [0], [1], [0, 0, 1, 1], [], []>} : vector<2x32xf32>, vector<32x128xf32>, vector<2x128xf32> -> vector<2x128xf32>
    %112 = arith.addf %110, %111 : vector<2x128xf32>
    %113 = vector.extract_strided_slice %112 {offsets = [0, 0], sizes = [2, 32], strides = [1, 1]} : vector<2x128xf32> to vector<2x32xf32>
    %114 = arith.negf %113 : vector<2x32xf32>
    %115 = math.exp %114 : vector<2x32xf32>
    %cst_33 = arith.constant 1.000000e+00 : f32
    %116 = vector.broadcast %cst_33 : f32 to vector<2x32xf32>
    %117 = arith.addf %116, %115 : vector<2x32xf32>
    %118 = arith.divf %116, %117 : vector<2x32xf32>
    %119 = vector.extract_strided_slice %112 {offsets = [0, 32], sizes = [2, 32], strides = [1, 1]} : vector<2x128xf32> to vector<2x32xf32>
    %120 = arith.negf %119 : vector<2x32xf32>
    %121 = math.exp %120 : vector<2x32xf32>
    %cst_34 = arith.constant 1.000000e+00 : f32
    %122 = vector.broadcast %cst_34 : f32 to vector<2x32xf32>
    %123 = arith.addf %122, %121 : vector<2x32xf32>
    %124 = arith.divf %122, %123 : vector<2x32xf32>
    %125 = vector.extract_strided_slice %112 {offsets = [0, 64], sizes = [2, 32], strides = [1, 1]} : vector<2x128xf32> to vector<2x32xf32>
    %126 = math.tanh %125 : vector<2x32xf32>
    %127 = vector.extract_strided_slice %112 {offsets = [0, 96], sizes = [2, 32], strides = [1, 1]} : vector<2x128xf32> to vector<2x32xf32>
    %128 = arith.negf %127 : vector<2x32xf32>
    %129 = math.exp %128 : vector<2x32xf32>
    %cst_35 = arith.constant 1.000000e+00 : f32
    %130 = vector.broadcast %cst_35 : f32 to vector<2x32xf32>
    %131 = arith.addf %130, %129 : vector<2x32xf32>
    %132 = arith.divf %130, %131 : vector<2x32xf32>
    %133 = arith.mulf %124, %101 : vector<2x32xf32>
    %134 = arith.mulf %118, %126 : vector<2x32xf32>
    %135 = arith.addf %133, %134 : vector<2x32xf32>
    %136 = math.tanh %135 : vector<2x32xf32>
    %137 = arith.mulf %132, %136 : vector<2x32xf32>
    %138 = arith.index_cast %c3_i32 : i32 to index
    %c0_36 = arith.constant 0 : index
    %c0_37 = arith.constant 0 : index
    %139 = vector.load %arg3[%138, %c0_36, %c0_37] : memref<4x2x32xf32, #tpu.memory_space<vmem>>, vector<1x2x32xf32>
    %140 = vector.shape_cast %139 : vector<1x2x32xf32> to vector<2x32xf32>
    %141 = vector.shape_cast %137 : vector<2x32xf32> to vector<1x2x32xf32>
    tpu.vector_store %arg3[%138, %c0_36, %c0_37], %141 {strides = array<i32>} : memref<4x2x32xf32, #tpu.memory_space<vmem>>, vector<1x2x32xf32>,
    %c4_i32 = arith.constant 4 : i32
    %c0_38 = arith.constant 0 : index
    %c0_39 = arith.constant 0 : index
    %142 = vector.load %arg4[%c0_38, %c0_39] : memref<2x32xf32, #tpu.memory_space<vmem>>, vector<2x32xf32>
    tpu.vector_store %arg4[%c0_38, %c0_39], %137 {strides = array<i32>} : memref<2x32xf32, #tpu.memory_space<vmem>>, vector<2x32xf32>,
    %c0_40 = arith.constant 0 : index
    %c0_41 = arith.constant 0 : index
    %143 = vector.load %arg5[%c0_40, %c0_41] : memref<2x32xf32, #tpu.memory_space<vmem>>, vector<2x32xf32>
    tpu.vector_store %arg5[%c0_40, %c0_41], %135 {strides = array<i32>} : memref<2x32xf32, #tpu.memory_space<vmem>>, vector<2x32xf32>,
    return
  }
  func.func @transform_0(%arg0: i32) -> (i32, i32, i32) {
    %c0_i32 = arith.constant 0 : i32
    %c0_i32_0 = arith.constant 0 : i32
    %c0_i32_1 = arith.constant 0 : i32
    return %arg0, %c0_i32, %c0_i32_0 : i32, i32, i32
  }
  func.func @transform_1(%arg0: i32) -> (i32, i32) {
    %c0_i32 = arith.constant 0 : i32
    %c0_i32_0 = arith.constant 0 : i32
    %c0_i32_1 = arith.constant 0 : i32
    return %c0_i32, %c0_i32_0 : i32, i32
  }
  func.func @transform_2(%arg0: i32) -> (i32, i32, i32) {
    %c0_i32 = arith.constant 0 : i32
    %c0_i32_0 = arith.constant 0 : i32
    %c0_i32_1 = arith.constant 0 : i32
    return %arg0, %c0_i32, %c0_i32_0 : i32, i32, i32
  }
}

</mosaic_0001>

<bundles_post_ra>
// kernel: tpu_custom_call.1
= control target key start
LH: loop header
LB: loop body
LE: loop exit
PB: predicated region body
PF: predicated region fallthrough
CT: control target
= control target key end

     0   :  { %7 = vsyncpa [#allocation5], 0  ;;  %s1352_s0 = inlined_call_operand.hbm [shape: f32[8,2,128], index: 0, kind: input, shape index: {}]   ;;  %s1353_s1 = inlined_call_operand.hbm [shape: f32[32,128], index: 1, kind: input, shape index: {}]   ;;  %s1354_s2 = inlined_call_operand.hbm [shape: f32[8,2,32], index: 2, kind: output, shape index: {}]  }
   0x1   :  { %9 = vsyncpa [#allocation5 + $0x1], 0 }
   0x2   :  { %10 = vsyncpa [#allocation8], 0 }
   0x3   :  { %11 = vsyncpa [#allocation6], 0 }
   0x4   :  { %13 = vsyncpa [#allocation6 + $0x1], 0  ;;  %s1102_s9 = smov 0   ;;  %s1104_s10 = smov 0  }
   0x5   :  { %s1106_s11 = smov 0   ;;  %s1108_s12 = smov 0  }
   0x6 LB: > { %s1123_s13 = sadd.s32 4294967295, %s1070_s12   ;;  %s720_s14 = sadd.s32 4294967294, %s1070_s12   ;;  %s1070_s12 = sphi %s1108_s12, %s1375_s12   ;;  %s1066_s11 = sphi %s1106_s11, %s1374_s11   ;;  %s1062_s10 = sphi %s1104_s10, %s1373_s10   ;;  %s1058_s9 = sphi %s1102_s9, %s1372_s9  }
   0x7   : > { %p39_p0 = scmp.ne.s32.totalorder %s1062_s10, %s1058_s9  ;;  %p1355_p1 = scmp.eq.s32.totalorder %s1123_s13, 0 }
   0x8   : > { %p90_p3 = scmp.eq.s32.totalorder %s720_s14, 1  ;;  %p721_p5 = scmp.ge.s32.totalorder %s1070_s12, 1 }
   0x9   : > { %p1132_p4 = por %p1355_p1, %p39_p0  ;;  %p97_p7 = scmp.lt.s32.totalorder %s1070_s12, 3 }
   0xa   : > { %p1137_p6 = por %p90_p3, %p39_p0  ;;  %s1072_s18 = smov [#allocation7]  }
   0xb   : > { %s1358_s15 = scalar_select %p1132_p4, 1, 0 }
   0xc   : > { %s1359_s16 = scalar_select %p1137_p6, 1, 0 }
   0xd   : > { %p1143_p9 = pnand %p721_p5, %p97_p7  ;;  %s109_s19 = sshll.u32 %s1072_s18, 4  ;;  %s1147_s19 = int_to_ptr.vmem [resolvable:$true] %s109_s19 }
   0xe   : > { %s1159_s21 = sadd.s32 1, %s1070_s12   ;;  %s26_s22 = sadd.s32 1, %s1066_s11 }
   0xf   : > { %s1360_s17 = scalar_select %p1143_p9, 1, 0 }
  0x10   : > { %p849_p10 = pneg %p1143_p9  ;;  %s23_s23 = ssub.s32 %s1070_s12, %s1159_s21 }
  0x11   : > { %s942_s26 = scalar_lea.hbm %s1353_s1, 512 }
  0x12   : > { %p1154_p12 = pnand %p849_p10, %p1355_p1  ;;  %p943_p13 = scmp.ne.s32.totalorder %s1353_s1, %s942_s26 }
  0x13   : > { %p949_p7 = scmp.lt.u32.totalorder %s942_s26, %s1353_s1 }
  0x14   : > { %p944_p0 = pneg %p1154_p12 }
  0x16   : > { %p945_p3 = pnand %p944_p0, %p943_p13 }
  0x18   : > { %p946_p5 = pneg %p945_p3 }
  0x1a   : > { %p951_p10 = pnand %p949_p7, %p946_p5 }
  0x1c   : > { %954 = shalt.err (!%p951_p10)
}
  0x1d   : > { %s955_s3 = scalar_lea.vmem %s1147_s19, 512  ;;  %p963_p2 = scmp.lt.s32.totalorder %s1147_s19, %s1147_s19 }
  0x1e   : > { %p956_p11 = scmp.ne.s32.totalorder %s1147_s19, %s955_s3  ;;  %p964_p6 = scmp.lt.s32.totalorder %s955_s3, %s955_s3 }
  0x20   : > { %p958_p8 = pnand %p956_p11, %p944_p0  ;;  %p965_p4 = por %p964_p6, %p963_p2 }
  0x22   : > { %p959_p1 = pneg %p958_p8 }
  0x24   : > { %p966_p9 = pnand %p965_p4, %p959_p1 }
  0x26   : > { %969 = shalt.err (!%p966_p9)
}
  0x27   : > { %s1073_s4 = smov 128   ;;  %s1074_s5 = smov 8  }
  0x28   : > { %852 = dma.hbm_to_vmem [thread:$0]  (!%p1154_p12), %s1353_s1, 512, %s1147_s19, [#allocation8], %s1073_s4, %s1073_s4, %s1074_s5  }
  0x29   : > { %p24_p2 = scmp.eq.s32.totalorder %s23_s23, 0  ;;  %p33_p1 = scmp.ne.s32.totalorder %s1066_s11, %s1062_s10 }
  0x2a   : > { %p34_p4 = scmp.eq.s32.totalorder %s1070_s12, 0  ;;  %p862_p6 = scmp.lt.s32.totalorder %s1070_s12, 2 }
  0x2b   : > { %s1190_s8 = scalar_select %p24_p2, %s1066_s11, %s26_s22  }
  0x2c   : > { %p35_p8 = por %p34_p4, %p33_p1  ;;  %p1362_p9 = scmp.eq.s32.totalorder %s1123_s13, 1 }
  0x2d   : > { %s123_s18 = sand.u32 1, %s1066_s11   ;;  %s751_s24 = sshll.u32 %s1070_s12, 7 }
  0x2e   : > { %p1194_p11 = por %p1362_p9, %p33_p1  ;;  %s724_s25 = sshll.u32 %s123_s18, 3 }
  0x2f   : > { %s1203_s27 = scalar_lea.hbm %s1352_s0, %s751_s24  ;;  %s127_s19 = scalar_lea.vmem [#allocation4], %s724_s25 }
  0x30   : > { %s134_s22 = sshll.u32 %s127_s19, 4  ;;  %p1205_p12 = pnand %p862_p6, %p35_p8  ;;  %s1209_s22 = int_to_ptr.vmem [resolvable:$true] %s134_s22 }
  0x31   : > { %s1211_s28 = scalar_lea.sflag [#allocation5], %s123_s18  ;;  %s970_s29 = scalar_lea.hbm %s1203_s27, 128 }
  0x32   : > { %p971_p13 = scmp.ne.s32.totalorder %s1203_s27, %s970_s29  ;;  %p972_p0 = pneg %p1205_p12 }
  0x33   : > { %s975_s4 = scalar_lea.hbm %s1352_s0, 256  ;;  %p976_p7 = scmp.lt.u32.totalorder %s1203_s27, %s1352_s0 }
  0x34   : > { %p973_p3 = pnand %p972_p0, %p971_p13  ;;  %p977_p10 = scmp.lt.u32.totalorder %s975_s4, %s970_s29 }
  0x35   : > { %p979_p1 = scmp.lt.u32.totalorder %s970_s29, %s1203_s27 }
  0x36   : > { %p974_p5 = pneg %p973_p3  ;;  %p978_p2 = por %p977_p10, %p976_p7 }
  0x38   : > { %p980_p4 = por %p979_p1, %p978_p2 }
  0x3a   : > { %p981_p6 = pnand %p980_p4, %p974_p5 }
  0x3c   : > { %984 = shalt.err (!%p981_p6)
}
  0x3d   : > { %s985_s7 = scalar_lea.vmem %s1209_s22, 128  ;;  %s1075_s18 = smov [#allocation4]  }
  0x3e   : > { %p986_p8 = scmp.ne.s32.totalorder %s1209_s22, %s985_s7  ;;  %s990_s24 = sshll.u32 %s1075_s18, 4  ;;  %s991_s24 = int_to_ptr.vmem [resolvable:$false] %s990_s24 }
  0x3f   : > { %s992_s25 = scalar_lea.vmem %s991_s24, 256  ;;  %p993_p3 = scmp.lt.s32.totalorder %s1209_s22, %s991_s24 }
  0x40   : > { %p988_p9 = pnand %p986_p8, %p972_p0  ;;  %p994_p7 = scmp.lt.s32.totalorder %s992_s25, %s985_s7 }
  0x42   : > { %p989_p13 = pneg %p988_p9  ;;  %p995_p10 = por %p994_p7, %p993_p3 }
  0x44   : > { %p996_p2 = pnand %p995_p10, %p989_p13 }
  0x46   : > { %999 = shalt.err (!%p996_p2)
}
  0x47   : > { %s1076_s20 = smov 32   ;;  %s1077_s26 = smov 2  }
  0x48   : > { %856 = dma.hbm_to_vmem [thread:$0]  (!%p1205_p12), %s1203_s27, 128, %s1209_s22, %s1211_s28, %s1076_s20, %s1076_s20, %s1077_s26  }
  0x49   : > { %p1365_p0 = scmp.ne.s32.totalorder %s1360_s17, 0 }
  0x4a   : > { %s1242_s19 = sand.u32 (!%p1365_p0), 1, %s1062_s10   ;;  %p1366_p5 = scmp.ne.s32.totalorder (!%p1365_p0), %s1358_s15, 0 }
  0x4b   : > { %146 = sbr.rel (%p1365_p0) target bundleno = 2928 (0xb70), region = 28  ;;  %s728_s29 = sshll.u32 (!%p1365_p0), %s1242_s19, 3 }
  0x4c   : > { %s149_s30 = scalar_lea.sflag (!%p1365_p0), [#allocation5], %s1242_s19  ;;  %s1246_s3 = scalar_lea.vmem (!%p1365_p0), [#allocation4], %s728_s29 }
  0x52   : > { %1045 = dma.done.wait (%p1366_p5), %s149_s30, 128  }
  0x53   : > { %1047 = vsyncadd (%p1366_p5), %s149_s30, 4294967168  ;;  %p1367_p12 = scmp.eq.s32.totalorder %s1123_s13, 0 }
  0x55   : > { %1049 = dma.done.wait (%p1367_p12), [#allocation8], 512   ;;  %p1368_p1 = pmov %p1367_p12 }
  0x56   : > { %s1256_s17 = scalar_lea.vmem [#allocation9], %s728_s29  ;;  %p1369_p4 = scmp.ne.s32.totalorder %s1123_s13, 0 }
  0x57   : > { %1051 = vsyncadd (%p1368_p1), [#allocation8], 4294966784  ;;  %vm183_vm0 = vcmask (!%p1369_p4), 254976   ;;  %v1078_v0 = vmov (!%p1369_p4), 0.0  }
  0x58   : > { %182 = sbr.rel (%p1369_p4) target bundleno = 95 (0x5f), region = 40  ;;  %184 = vst.msk [vmem:[#allocation2] sm:$0x3] (!%p1369_p4), %vm183_vm0, %v1078_v0  ;;  %185 = vst.msk [vmem:[#allocation3] sm:$0x3] (!%p1369_p4), %vm183_vm0, %v1078_v0 }
  0x5f PF: > { %v186_v1 = vld [vmem:[#allocation7] sm:$0xff]  ;;  %v187_v2 = vld [vmem:[#allocation7 + $0x8] sm:$0xff]  ;;  %v188_v3 = vld [vmem:[#allocation7 + $0x10] sm:$0xff]  ;;  %v1079_v4 = vmov 0.0|0.0   ;;  %vm1080_vm1 = vmmov 0   ;;  %v1081_v7 = vmov 0.0  }
  0x60   : > { %817 = vmatprep.subr.bf16.mxu0 %v1079_v4  ;;  %v818_v5 = vpack.c.bf16 %v187_v2, %v186_v1  ;;  %v189_v6 = vld [vmem:[#allocation7 + $0x18] sm:$0xff]  ;;  %781 = vmatprep.mubr.msk.f32.mxu0 %vm1080_vm1, %v1081_v7  ;;  %v190_v9 = vld [vmem:[#allocation2] sm:$0x3]  ;;  %vm193_vm2 = vcmask 261120   ;;  %s1082_s15 = smov 64   ;;  %s1083_s27 = smov 32  }
  0x61   : > { %823 = vmatprep.subr.bf16.mxu1 %v1079_v4  ;;  %792 = vmatprep.mubr.msk.f32.mxu1 %vm1080_vm1, %v1081_v7  ;;  %v821_v8 = vpack.c.bf16 %v189_v6, %v188_v3  ;;  %v192_v10 = vld [vmem:[%s1246_s3] sm:$0x3]  ;;  %v191_v15 = vld [vmem:[#allocation3] sm:$0x3]  ;;  %vm300_vm3 = vcmask 254976   ;;  %s1084_s22 = smov 96  }
  0x62   : > { %819 = vmatpush3.bf16.msra.mxu0 %v818_v5  ;;  %825 = vmatpush3.bf16.msra.mxu1 %v818_v5  ;;  %v734_v30 = vld [vmem:[%s1246_s3 + $0x2] sm:$0x3]  ;;  %v738_v48 = vld [vmem:[%s1246_s3 + $0x4] sm:$0x3]  ;;  %v742_v2 = vld [vmem:[%s1246_s3 + $0x6] sm:$0x3] }
  0x63   : > { %820 = vmatprep.subr.bf16.mxu0 %v1079_v4  ;;  %826 = vmatprep.subr.bf16.mxu1 %v1079_v4  ;;  %s752_s23 = sshll.u32 %s1123_s13, 7  ;;  %s637_s28 = sshll.u32 %s1256_s17, 4  ;;  %s1303_s28 = int_to_ptr.vmem [resolvable:$true] %s637_s28 }
  0x64   : > { %s1301_s6 = scalar_lea.hbm %s1354_s2, %s752_s23  ;;  %s624_s7 = scalar_lea.sflag [#allocation6], %s1242_s19 }
  0x65   : > { %s1000_s18 = scalar_lea.vmem %s1303_s28, 128  ;;  %s1085_s13 = smov [#allocation9]  }
  0x66   : > { %822 = vmatpush3.bf16.msra.mxu0 %v821_v8  ;;  %828 = vmatpush3.bf16.msra.mxu1 %v821_v8  ;;  %p1001_p6 = scmp.ne.s32.totalorder %s1303_s28, %s1000_s18  ;;  %s1004_s24 = sshll.u32 %s1085_s13, 4  ;;  %s1005_s24 = int_to_ptr.vmem [resolvable:$false] %s1004_s24 }
  0x67   : > { %829 = vmatprep.subr.bf16.mxu0 %v1079_v4  ;;  %835 = vmatprep.subr.bf16.mxu1 %v1079_v4  ;;  %s1006_s25 = scalar_lea.vmem %s1005_s24, 256  ;;  %p1007_p13 = scmp.lt.s32.totalorder %s1303_s28, %s1005_s24 }
  0x68   : > { %p1002_p8 = pnand %p1001_p6, %p1194_p11  ;;  %p1008_p3 = scmp.lt.s32.totalorder %s1006_s25, %s1000_s18 }
  0x69   : > { %782 = vmatmul.mubr.msk.f32.vlgmr.msra.gmra.mrb[0].mxu0 %vm193_vm2, %v190_v9 }
  0x6a   : > { %831 = vmatpush3.bf16.msra.mxu0 %v818_v5  ;;  %803 = vmatprep.mubr.msk.f32.mxu0 %vm1080_vm1, %v1081_v7  ;;  %p1003_p9 = pneg %p1002_p8  ;;  %p1009_p7 = por %p1008_p3, %p1007_p13 }
  0x6b   : > { %832 = vmatprep.subr.bf16.mxu0 %v1079_v4 }
  0x6c   : > { %p1010_p10 = pnand %p1009_p7, %p1003_p9 }
  0x6e   : > { %834 = vmatpush3.bf16.msra.mxu0 %v821_v8 }
 0x13c   : > { %v263_v11 = vpop.f32.mrb[0].mxu0 }
 0x13d   : > { %v267_v12 = vadd.f32 %v263_v11, %v192_v10  ;;  %v783_v13 = vpop.f32.mrb[1].mxu0 }
 0x13f   : > { %910 = vtanh.f32 %v267_v12  ;;  %v733_v16 = vmul.f32 -1.442695, %v267_v12 }
 0x141   : > { %912 = vpow2.f32 %v733_v16 }
 0x149   : > { %v911_v14 = vpop.eup %910 }
 0x14a   : > { %281 = vrot.lane.b32.xlu0 %v911_v14, %s1082_s15 }
 0x14b   : > { %v913_v17 = vpop.eup %912 }
 0x14c   : > { %v271_v18 = vadd.f32 1.0, %v913_v17 }
 0x14e   : > { %276 = vrot.lane.b32.xlu0 %v191_v15, %s1083_s27  ;;  %914 = vrcp.f32 %v271_v18 }
 0x158   : > { %v915_v19 = vpop.eup %914 }
 0x1bc   : > { %v282_v20 = vpop.permute.xlu0 %281 }
 0x1bd   : > { %v284_v21 = vmul.f32 %v915_v19, %v282_v20 }
 0x1bf   : > { %286 = vrot.lane.b32.xlu1 %v284_v21, %s1083_s27 }
 0x1c0   : > { %v277_v22 = vpop.permute.xlu0 %276 }
 0x1c1   : > { %v279_v23 = vmul.f32 %v915_v19, %v277_v22 }
 0x231   : > { %v287_v24 = vpop.permute.xlu1 %286 }
 0x232   : > { %v289_v25 = vadd.f32 %v287_v24, %v279_v23 }
 0x234   : > { %916 = vtanh.f32 %v289_v25 }
 0x23e   : > { %v917_v26 = vpop.eup %916 }
 0x23f   : > { %292 = vrot.lane.b32.xlu1 %v917_v26, %s1082_s15 }
 0x2b1   : > { %v293_v27 = vpop.permute.xlu1 %292 }
 0x2b2   : > { %v295_v28 = vmul.f32 %v915_v19, %v293_v27 }
 0x2b4   : > { %297 = vrot.lane.b32.xlu0 %v295_v28, %s1083_s27 }
 0x326   : > { %v298_v29 = vpop.permute.xlu0 %297 }
 0x327   : > { %301 = vst.msk [vmem:[%s1256_s17] sm:$0x3] %vm300_vm3, %v298_v29  ;;  %793 = vmatmul.mubr.msk.f32.vlgmr.msra.gmra.mrb[0].mxu1 %vm193_vm2, %v298_v29 }
 0x328   : > { %837 = vmatpush3.bf16.msra.mxu1 %v818_v5  ;;  %814 = vmatprep.mubr.msk.f32.mxu1 %vm1080_vm1, %v1081_v7 }
 0x329   : > { %838 = vmatprep.subr.bf16.mxu1 %v1079_v4 }
 0x32c   : > { %840 = vmatpush3.bf16.msra.mxu1 %v821_v8 }
 0x3fa   : > { %v372_v31 = vpop.f32.mrb[0].mxu1 }
 0x3fb   : > { %v376_v32 = vadd.f32 %v734_v30, %v372_v31  ;;  %v794_v33 = vpop.f32.mrb[1].mxu1 }
 0x3fd   : > { %918 = vtanh.f32 %v376_v32  ;;  %v736_v35 = vmul.f32 -1.442695, %v376_v32 }
 0x3ff   : > { %920 = vpow2.f32 %v736_v35 }
 0x407   : > { %v919_v34 = vpop.eup %918 }
 0x408   : > { %386 = vrot.lane.b32.xlu1 %v919_v34, %s1082_s15 }
 0x409   : > { %v921_v36 = vpop.eup %920 }
 0x40a   : > { %v380_v37 = vadd.f32 1.0, %v921_v36 }
 0x40c   : > { %922 = vrcp.f32 %v380_v37 }
 0x416   : > { %v923_v38 = vpop.eup %922 }
 0x417   : > { %v384_v41 = vmul.f32 %v923_v38, %v289_v25 }
 0x47a   : > { %v387_v39 = vpop.permute.xlu1 %386 }
 0x47b   : > { %v389_v40 = vmul.f32 %v923_v38, %v387_v39 }
 0x47d   : > { %391 = vrot.lane.b32.xlu0 %v389_v40, %s1083_s27 }
 0x4ef   : > { %v392_v42 = vpop.permute.xlu0 %391 }
 0x4f0   : > { %v394_v43 = vadd.f32 %v392_v42, %v384_v41 }
 0x4f2   : > { %924 = vtanh.f32 %v394_v43 }
 0x4fc   : > { %v925_v44 = vpop.eup %924 }
 0x4fd   : > { %397 = vrot.lane.b32.xlu1 %v925_v44, %s1082_s15 }
 0x56f   : > { %v398_v45 = vpop.permute.xlu1 %397 }
 0x570   : > { %v400_v46 = vmul.f32 %v923_v38, %v398_v45 }
 0x572   : > { %402 = vrot.lane.b32.xlu0 %v400_v46, %s1083_s27 }
 0x5e4   : > { %v403_v47 = vpop.permute.xlu0 %402 }
 0x5e5   : > { %737 = vst.msk [vmem:[%s1256_s17 + $0x2] sm:$0x3] %vm300_vm3, %v403_v47  ;;  %804 = vmatmul.mubr.msk.f32.vlgmr.msra.gmra.mrb[2].mxu0 %vm193_vm2, %v403_v47 }
 0x6b8   : > { %v477_v49 = vpop.f32.mrb[2].mxu0 }
 0x6b9   : > { %v481_v50 = vadd.f32 %v738_v48, %v477_v49  ;;  %v805_v51 = vpop.f32.mrb[3].mxu0 }
 0x6bb   : > { %926 = vtanh.f32 %v481_v50  ;;  %v740_v53 = vmul.f32 -1.442695, %v481_v50 }
 0x6bd   : > { %928 = vpow2.f32 %v740_v53 }
 0x6c5   : > { %v927_v52 = vpop.eup %926 }
 0x6c6   : > { %491 = vrot.lane.b32.xlu1 %v927_v52, %s1082_s15 }
 0x6c7   : > { %v929_v54 = vpop.eup %928 }
 0x6c8   : > { %v485_v55 = vadd.f32 1.0, %v929_v54 }
 0x6ca   : > { %930 = vrcp.f32 %v485_v55 }
 0x6d4   : > { %v931_v56 = vpop.eup %930 }
 0x6d5   : > { %v489_v59 = vmul.f32 %v931_v56, %v394_v43 }
 0x738   : > { %v492_v57 = vpop.permute.xlu1 %491 }
 0x739   : > { %v494_v58 = vmul.f32 %v931_v56, %v492_v57 }
 0x73b   : > { %496 = vrot.lane.b32.xlu0 %v494_v58, %s1083_s27 }
 0x7ad   : > { %v497_v60 = vpop.permute.xlu0 %496 }
 0x7ae   : > { %v499_v61 = vadd.f32 %v497_v60, %v489_v59 }
 0x7b0   : > { %932 = vtanh.f32 %v499_v61 }
 0x7ba   : > { %v933_v62 = vpop.eup %932 }
 0x7bb   : > { %502 = vrot.lane.b32.xlu1 %v933_v62, %s1082_s15 }
 0x82d   : > { %v503_v63 = vpop.permute.xlu1 %502 }
 0x82e   : > { %v505_v0 = vmul.f32 %v931_v56, %v503_v63 }
 0x830   : > { %507 = vrot.lane.b32.xlu0 %v505_v0, %s1083_s27 }
 0x8a2   : > { %v508_v1 = vpop.permute.xlu0 %507 }
 0x8a3   : > { %741 = vst.msk [vmem:[%s1256_s17 + $0x4] sm:$0x3] %vm300_vm3, %v508_v1  ;;  %815 = vmatmul.mubr.msk.f32.vlgmr.msra.gmra.mrb[2].mxu1 %vm193_vm2, %v508_v1 }
 0x976   : > { %v582_v3 = vpop.f32.mrb[2].mxu1 }
 0x977   : > { %v586_v4 = vadd.f32 %v742_v2, %v582_v3  ;;  %v816_v5 = vpop.f32.mrb[3].mxu1 }
 0x979   : > { %934 = vtanh.f32 %v586_v4  ;;  %v744_v7 = vmul.f32 -1.442695, %v586_v4 }
 0x97b   : > { %936 = vpow2.f32 %v744_v7 }
 0x983   : > { %v935_v6 = vpop.eup %934 }
 0x984   : > { %596 = vrot.lane.b32.xlu1 %v935_v6, %s1082_s15 }
 0x985   : > { %v937_v8 = vpop.eup %936 }
 0x986   : > { %v590_v9 = vadd.f32 1.0, %v937_v8 }
 0x988   : > { %938 = vrcp.f32 %v590_v9 }
 0x992   : > { %v939_v10 = vpop.eup %938 }
 0x993   : > { %v594_v13 = vmul.f32 %v939_v10, %v499_v61 }
 0x9f6   : > { %v597_v11 = vpop.permute.xlu1 %596 }
 0x9f7   : > { %v599_v12 = vmul.f32 %v939_v10, %v597_v11 }
 0x9f9   : > { %601 = vrot.lane.b32.xlu0 %v599_v12, %s1083_s27 }
 0xa6b   : > { %v602_v14 = vpop.permute.xlu0 %601 }
 0xa6c   : > { %v604_v15 = vadd.f32 %v602_v14, %v594_v13 }
 0xa6e   : > { %940 = vtanh.f32 %v604_v15 }
 0xa78   : > { %v941_v16 = vpop.eup %940 }
 0xa79   : > { %607 = vrot.lane.b32.xlu1 %v941_v16, %s1082_s15 }
 0xa7d   : > { %619 = vrot.lane.b32.xlu1 %v604_v15, %s1084_s22 }
 0xaeb   : > { %v608_v17 = vpop.permute.xlu1 %607 }
 0xaec   : > { %v610_v18 = vmul.f32 %v939_v10, %v608_v17 }
 0xaee   : > { %612 = vrot.lane.b32.xlu0 %v610_v18, %s1083_s27 }
 0xaef   : > { %v620_v19 = vpop.permute.xlu1 %619 }
 0xaf0   : > { %622 = vst.msk [vmem:[#allocation3] sm:$0x3] %vm300_vm3, %v620_v19 }
 0xb60   : > { %v613_v20 = vpop.permute.xlu0 %612 }
 0xb61   : > { %745 = vst.msk [vmem:[%s1256_s17 + $0x6] sm:$0x3] %vm300_vm3, %v613_v20  ;;  %617 = vst.msk [vmem:[#allocation2] sm:$0x3] %vm300_vm3, %v613_v20 }
 0xb62   : > { %1013 = shalt.err (!%p1010_p10)
}
 0xb63   : > { %s1014_s20 = scalar_lea.hbm %s1301_s6, 128  ;;  %s1018_s30 = scalar_lea.hbm %s1354_s2, 256 }
 0xb64   : > { %p1015_p2 = scmp.ne.s32.totalorder %s1301_s6, %s1014_s20  ;;  %p1019_p12 = scmp.lt.u32.totalorder %s1301_s6, %s1354_s2 }
 0xb65   : > { %p1020_p1 = scmp.lt.u32.totalorder %s1018_s30, %s1014_s20  ;;  %p1022_p6 = scmp.lt.u32.totalorder %s1014_s20, %s1301_s6 }
 0xb66   : > { %p1016_p0 = pnand %p1015_p2, %p1194_p11 }
 0xb67   : > { %p1021_p4 = por %p1020_p1, %p1019_p12 }
 0xb68   : > { %p1017_p5 = pneg %p1016_p0 }
 0xb69   : > { %p1023_p8 = por %p1022_p6, %p1021_p4 }
 0xb6b   : > { %p1024_p9 = pnand %p1023_p8, %p1017_p5 }
 0xb6d   : > { %1027 = shalt.err (!%p1024_p9)
}
 0xb6e   : > { %s1086_s15 = smov 2  }
 0xb6f   : > { %847 = dma.vmem_to_hbm [thread:$0]  (%p1194_p11), %s1303_s28, 128, %s1301_s6, %s624_s7, %s1083_s27, %s1083_s27, %s1086_s15  }
 0xb70 PF: > { %s652_s22 = sand.u32 1, %s1058_s9   ;;  %p1370_p13 = scmp.ne.s32.totalorder %s1359_s16, 0 }
 0xb71   : > { %p1371_p3 = scmp.ge.s32.totalorder %s1070_s12, 2  ;;  %s653_s23 = scalar_lea.sflag [#allocation6], %s652_s22 }
 0xb73   : > { %p858_p7 = pnand %p1371_p3, %p1370_p13 }
 0xb75   : > { %1053 = dma.done.wait (!%p858_p7), %s653_s23, 128  }
 0xb76   : > { %1055 = vsyncadd (!%p858_p7), %s653_s23, 4294967168  ;;  %p16_p10 = scmp.ge.s32.totalorder %s1159_s21, 4   ;;  %s1372_s9 = smov %s1062_s10 }
 0xb77   : > { %s1373_s10 = smov %s1066_s11  ;;  %s1374_s11 = smov %s1190_s8 }
 0xb78   : > { %s1375_s12 = smov %s1159_s21  ;;  %18 = sbr.rel (!%p16_p10) target bundleno = 6 (0x6), region = 87 }
 0xb7f   :  { %658 = vsyncpa [#allocation5], 1 }
 0xb80   :  { %660 = vsyncpa [#allocation5 + $0x1], 1 }
 0xb81   :  { %661 = vsyncpa [#allocation8], 1 }
 0xb82   :  { %662 = vsyncpa [#allocation6], 1 }
 0xb83   :  { %664 = vsyncpa [#allocation6 + $0x1], 1 }

</bundles_post_ra>
